<compile_context>
chip_gen: v6e
topology: v6e:2x2x1
jax: 0.10.0
libtpu: 0.0.40
codegen_flags: <defaults>
</compile_context>

<pallas_src>
import functools

import jax
import jax.numpy as jnp
from jax import lax
from jax.experimental import pallas as pl
from jax.experimental.pallas import tpu as pltpu


def _round_up(x, m):
    return ((x + m - 1) // m) * m


def binary_quantizer_kernel(h_ref, w_ref, b_ref, e_ref,
                            zq_ref, zb_ref, lp_ref,
                            *, m_real, n_real, tm):
    i = pl.program_id(0)

    # Linear proj: z = h @ W^T + bias.  W stays in its native (N, D) layout;
    # contract h's D (dim 1) against w's D (dim 1).
    z = lax.dot_general(
        h_ref[...], w_ref[...],
        dimension_numbers=(((1,), (1,)), ((), ())),
        preferred_element_type=jnp.float32,
    ) + b_ref[...]

    n_pad = z.shape[1]

    # Deterministic quantizer, computed from the pre-activation:
    #   (sigmoid(z) > 0.5)  <=>  (z > 0)   (exact equivalence, both false at z == 0)
    # This keeps the second matmul off the EUP sigmoid's critical path.
    z_b = (z > 0.0).astype(jnp.float32)
    zb_ref[...] = z_b.astype(zb_ref.dtype)

    # Straight-through forward value: z_flow == z_b.  z_q = z_b @ embed.
    # z_b in {0,1} is exact in bf16; embed was pre-cast to bf16 in the wrapper.
    zq_ref[...] = jnp.dot(
        z_b.astype(jnp.bfloat16), e_ref[...],
        preferred_element_type=jnp.float32,
    ).astype(zq_ref.dtype)

    # Codebook loss partial: sum of sigmoid(z)*(1-sigmoid(z)) over real (unpadded)
    # entries of this tile, folded down to a single (8, n_pad) slab with plain
    # VPU adds (no per-step cross-lane reduce; final reduce happens in JAX).
    z_normed = jax.nn.sigmoid(z)
    var = z_normed * (1.0 - z_normed)
    row_id = i * tm + lax.broadcasted_iota(jnp.int32, (tm, n_pad), 0)
    col_id = lax.broadcasted_iota(jnp.int32, (tm, n_pad), 1)
    var = jnp.where((row_id < m_real) & (col_id < n_real), var, 0.0)
    part = jnp.sum(var.reshape(tm // 8, 8, n_pad), axis=0)       # (8, n_pad)
    lp_ref[...] = part[None]


def binary_quantizer_forward(h, w, b, embed, *, tm=256):
    """h: (B, L, D); w: (N, D); b: (N,); embed: (N, D). Deterministic/eval path."""
    B, L, D = h.shape
    N = w.shape[0]
    M = B * L

    f32 = jnp.float32
    # Lane-dense padding (last dims multiples of 128) + row-tile padding.
    D_pad = _round_up(D, 128)
    N_pad = _round_up(N, 128)
    tm = min(tm, _round_up(M, 8))          # don't over-tile tiny inputs
    M_pad = _round_up(M, tm)
    num_tiles = M_pad // tm

    h2 = jnp.pad(h.reshape(M, D).astype(f32), ((0, M_pad - M), (0, D_pad - D)))
    w2 = jnp.pad(jnp.asarray(w, f32), ((0, N_pad - N), (0, D_pad - D)))
    b2 = jnp.pad(jnp.asarray(b, f32).reshape(1, N), ((0, 0), (0, N_pad - N)))
    e2 = jnp.pad(jnp.asarray(embed).astype(jnp.bfloat16),
                 ((0, N_pad - N), (0, D_pad - D)))

    kernel = functools.partial(binary_quantizer_kernel,
                               m_real=M, n_real=N, tm=tm)

    z_q, z_b, loss_parts = pl.pallas_call(
        kernel,
        out_shape=(
            jax.ShapeDtypeStruct((M_pad, D_pad), h.dtype),          # z_q rows
            jax.ShapeDtypeStruct((M_pad, N_pad), h.dtype),          # binary code rows
            jax.ShapeDtypeStruct((num_tiles, 8, N_pad), jnp.float32),  # loss partials
        ),
        grid_spec=pltpu.PrefetchScalarGridSpec(
            num_scalar_prefetch=0,
            grid=(num_tiles,),
            in_specs=[
                pl.BlockSpec((tm, D_pad), lambda i: (i, 0)),      # h rows
                pl.BlockSpec((N_pad, D_pad), lambda i: (0, 0)),   # W (resident, (N, D))
                pl.BlockSpec((1, N_pad), lambda i: (0, 0)),       # bias (resident)
                pl.BlockSpec((N_pad, D_pad), lambda i: (0, 0)),   # embed bf16 (resident)
            ],
            out_specs=[
                pl.BlockSpec((tm, D_pad), lambda i: (i, 0)),
                pl.BlockSpec((tm, N_pad), lambda i: (i, 0)),
                pl.BlockSpec((1, 8, N_pad), lambda i: (i, 0, 0)),
            ],
        ),
        compiler_params=pltpu.CompilerParams(
            # No cross-step carry -> grid axis can shard across TensorCores (v7x).
            dimension_semantics=("parallel",)),
    )(h2, w2, b2, e2)

    code_book_loss = jnp.sum(loss_parts) / jnp.float32(M * N)
    return (z_q[:M, :D].reshape(B, L, D),
            code_book_loss,
            {"binary_code": z_b[:M, :N].reshape(B, L, N)})


if __name__ == "__main__":
    key = jax.random.PRNGKey(0)
    B, L = 2, 8                 # batch, num_latent_tokens
    emb_dim = 32
    codebook_size = 64

    k1, k2, k3, k4 = jax.random.split(key, 4)
    h = jax.random.normal(k1, (B, L, emb_dim), dtype=jnp.float32)

    # nn.Linear(emb_dim, codebook_size): weight (N, D), bias (N,), U(-1/sqrt(D), 1/sqrt(D))
    bound = 1.0 / (emb_dim ** 0.5)
    w = jax.random.uniform(k2, (codebook_size, emb_dim),
                           minval=-bound, maxval=bound, dtype=jnp.float32)
    b = jax.random.uniform(k3, (codebook_size,),
                           minval=-bound, maxval=bound, dtype=jnp.float32)
    # self.embed ~ N(0, 0.02)
    embed = 0.02 * jax.random.normal(k4, (codebook_size, emb_dim), dtype=jnp.float32)

    z_q, loss, aux = binary_quantizer_forward(h, w, b, embed)
    jax.block_until_ready((z_q, loss, aux["binary_code"]))

    # Pure-JAX reference (deterministic path).
    z_ref = h.reshape(-1, emb_dim) @ w.T + b
    zn_ref = jax.nn.sigmoid(z_ref)
    loss_ref = jnp.mean(zn_ref * (1.0 - zn_ref))
    # (z > 0) is exactly equivalent to (sigmoid(z) > 0.5).
    zb_ref = (z_ref > 0.0).astype(jnp.float32)
    zq_ref = (zb_ref @ embed).reshape(B, L, emb_dim)

    assert jnp.array_equal(aux["binary_code"].reshape(-1, codebook_size), zb_ref)
    assert jnp.allclose(loss, loss_ref, atol=1e-6, rtol=1e-5)
    # Kernel uses bf16 embed for the second matmul (f32 accumulate) -> loose tolerance
    # against the full-f32 reference.
    assert jnp.allclose(z_q, zq_ref, atol=5e-3, rtol=1e-2)

    print("KERNEL_OK")
</pallas_src>

<mosaic_0001>
module attributes {stable_mosaic.version = 11 : i64} {
  func.func @binary_quantizer_kernel(%arg0: i32, %arg1: memref<16x128xf32, #tpu.memory_space<vmem>>, %arg2: memref<128x128xf32, #tpu.memory_space<vmem>>, %arg3: memref<1x128xf32, #tpu.memory_space<vmem>>, %arg4: memref<128x128xbf16, #tpu.memory_space<vmem>>, %arg5: memref<16x128xf32, #tpu.memory_space<vmem>>, %arg6: memref<16x128xf32, #tpu.memory_space<vmem>>, %arg7: memref<1x8x128xf32, #tpu.memory_space<vmem>>) attributes {dimension_semantics = [#tpu.dimension_semantics<parallel>], iteration_bounds = array<i64: 1>, scalar_prefetch = 0 : i64, scratch_operands = 0 : i64, tpu.core_type = #tpu.core_type<tc>, window_params = [{transform_indices = @transform_0, window_bounds = array<i64: 16, 128>}, {pipeline_mode = #tpu.pipeline_mode<synchronous>, transform_indices = @transform_1, window_bounds = array<i64: 128, 128>}, {pipeline_mode = #tpu.pipeline_mode<synchronous>, transform_indices = @transform_2, window_bounds = array<i64: 1, 128>}, {pipeline_mode = #tpu.pipeline_mode<synchronous>, transform_indices = @transform_3, window_bounds = array<i64: 128, 128>}, {transform_indices = @transform_4, window_bounds = array<i64: 16, 128>}, {transform_indices = @transform_5, window_bounds = array<i64: 16, 128>}, {transform_indices = @transform_6, window_bounds = array<i64: 1, 8, 128>}]} {
    %c0 = arith.constant 0 : index
    %c0_0 = arith.constant 0 : index
    %0 = vector.load %arg1[%c0, %c0_0] : memref<16x128xf32, #tpu.memory_space<vmem>>, vector<16x128xf32>
    %c0_1 = arith.constant 0 : index
    %c0_2 = arith.constant 0 : index
    %1 = vector.load %arg2[%c0_1, %c0_2] : memref<128x128xf32, #tpu.memory_space<vmem>>, vector<128x128xf32>
    %cst = arith.constant dense<0.000000e+00> : vector<16x128xf32>
    %2 = tpu.matmul %0, %1, %cst {dimension_numbers = #tpu.dot_dimension_numbers<[1], [1], [0], [0], [0, 0, 1, 0], [], []>} : vector<16x128xf32>, vector<128x128xf32>, vector<16x128xf32> -> vector<16x128xf32>
    %c0_3 = arith.constant 0 : index
    %c0_4 = arith.constant 0 : index
    %3 = vector.load %arg3[%c0_3, %c0_4] : memref<1x128xf32, #tpu.memory_space<vmem>>, vector<1x128xf32>
    %4 = vector.broadcast %3 : vector<1x128xf32> to vector<16x128xf32>
    %5 = arith.addf %2, %4 : vector<16x128xf32>
    %cst_5 = arith.constant 0.000000e+00 : f32
    %6 = vector.broadcast %cst_5 : f32 to vector<16x128xf32>
    %7 = arith.cmpf ogt, %5, %6 : vector<16x128xf32>
    %8 = arith.extui %7 : vector<16x128xi1> to vector<16x128xi32>
    %9 = arith.sitofp %8 : vector<16x128xi32> to vector<16x128xf32>
    %c0_6 = arith.constant 0 : index
    %c0_7 = arith.constant 0 : index
    %10 = vector.load %arg6[%c0_6, %c0_7] : memref<16x128xf32, #tpu.memory_space<vmem>>, vector<16x128xf32>
    tpu.vector_store %arg6[%c0_6, %c0_7], %9 {strides = array<i32>} : memref<16x128xf32, #tpu.memory_space<vmem>>, vector<16x128xf32>,
    %11 = arith.truncf %9 : vector<16x128xf32> to vector<16x128xbf16>
    %c0_8 = arith.constant 0 : index
    %c0_9 = arith.constant 0 : index
    %12 = vector.load %arg4[%c0_8, %c0_9] : memref<128x128xbf16, #tpu.memory_space<vmem>>, vector<128x128xbf16>
    %cst_10 = arith.constant dense<0.000000e+00> : vector<16x128xf32>
    %13 = tpu.matmul %11, %12, %cst_10 {dimension_numbers = #tpu.dot_dimension_numbers<[1], [0], [0], [1], [0, 0, 1, 1], [], []>} : vector<16x128xbf16>, vector<128x128xbf16>, vector<16x128xf32> -> vector<16x128xf32>
    %c0_11 = arith.constant 0 : index
    %c0_12 = arith.constant 0 : index
    %14 = vector.load %arg5[%c0_11, %c0_12] : memref<16x128xf32, #tpu.memory_space<vmem>>, vector<16x128xf32>
    tpu.vector_store %arg5[%c0_11, %c0_12], %13 {strides = array<i32>} : memref<16x128xf32, #tpu.memory_space<vmem>>, vector<16x128xf32>,
    %15 = arith.negf %5 : vector<16x128xf32>
    %16 = math.exp %15 : vector<16x128xf32>
    %cst_13 = arith.constant 1.000000e+00 : f32
    %17 = vector.broadcast %cst_13 : f32 to vector<16x128xf32>
    %18 = arith.addf %17, %16 : vector<16x128xf32>
    %19 = arith.divf %17, %18 : vector<16x128xf32>
    %cst_14 = arith.constant 1.000000e+00 : f32
    %20 = vector.broadcast %cst_14 : f32 to vector<16x128xf32>
    %21 = arith.subf %20, %19 : vector<16x128xf32>
    %22 = arith.mulf %19, %21 : vector<16x128xf32>
    %c16_i32 = arith.constant 16 : i32
    %23 = arith.muli %arg0, %c16_i32 : i32
    %24 = tpu.iota {dimensions = array<i32: 0>} : vector<16x128xi32>
    %25 = vector.broadcast %23 : i32 to vector<16x128xi32>
    %26 = arith.addi %25, %24 : vector<16x128xi32>
    %27 = tpu.iota {dimensions = array<i32: 1>} : vector<16x128xi32>
    %c16_i32_15 = arith.constant 16 : i32
    %28 = vector.broadcast %c16_i32_15 : i32 to vector<16x128xi32>
    %29 = arith.cmpi slt, %26, %28 : vector<16x128xi32>
    %c64_i32 = arith.constant 64 : i32
    %30 = vector.broadcast %c64_i32 : i32 to vector<16x128xi32>
    %31 = arith.cmpi slt, %27, %30 : vector<16x128xi32>
    %32 = arith.andi %29, %31 : vector<16x128xi1>
    %cst_16 = arith.constant 0.000000e+00 : f32
    %33 = vector.broadcast %cst_16 : f32 to vector<16x128xf32>
    %34 = arith.select %32, %22, %33 : vector<16x128xi1>, vector<16x128xf32>
    %35 = vector.shape_cast %34 : vector<16x128xf32> to vector<2x8x128xf32>
    %cst_17 = arith.constant dense<0.000000e+00> : vector<8x128xf32>
    %36 = vector.multi_reduction <add>, %35, %cst_17 [0] : vector<2x8x128xf32> to vector<8x128xf32>
    %37 = vector.shape_cast %36 : vector<8x128xf32> to vector<1x8x128xf32>
    %c0_18 = arith.constant 0 : index
    %c0_19 = arith.constant 0 : index
    %c0_20 = arith.constant 0 : index
    %38 = vector.load %arg7[%c0_18, %c0_19, %c0_20] : memref<1x8x128xf32, #tpu.memory_space<vmem>>, vector<1x8x128xf32>
    tpu.vector_store %arg7[%c0_18, %c0_19, %c0_20], %37 {strides = array<i32>} : memref<1x8x128xf32, #tpu.memory_space<vmem>>, vector<1x8x128xf32>,
    return
  }
  func.func @transform_0(%arg0: i32) -> (i32, i32) {
    %c0_i32 = arith.constant 0 : i32
    %c0_i32_0 = arith.constant 0 : i32
    return %arg0, %c0_i32 : i32, i32
  }
  func.func @transform_1(%arg0: i32) -> (i32, i32) {
    %c0_i32 = arith.constant 0 : i32
    %c0_i32_0 = arith.constant 0 : i32
    %c0_i32_1 = arith.constant 0 : i32
    return %c0_i32, %c0_i32_0 : i32, i32
  }
  func.func @transform_2(%arg0: i32) -> (i32, i32) {
    %c0_i32 = arith.constant 0 : i32
    %c0_i32_0 = arith.constant 0 : i32
    %c0_i32_1 = arith.constant 0 : i32
    return %c0_i32, %c0_i32_0 : i32, i32
  }
  func.func @transform_3(%arg0: i32) -> (i32, i32) {
    %c0_i32 = arith.constant 0 : i32
    %c0_i32_0 = arith.constant 0 : i32
    %c0_i32_1 = arith.constant 0 : i32
    return %c0_i32, %c0_i32_0 : i32, i32
  }
  func.func @transform_4(%arg0: i32) -> (i32, i32) {
    %c0_i32 = arith.constant 0 : i32
    %c0_i32_0 = arith.constant 0 : i32
    return %arg0, %c0_i32 : i32, i32
  }
  func.func @transform_5(%arg0: i32) -> (i32, i32) {
    %c0_i32 = arith.constant 0 : i32
    %c0_i32_0 = arith.constant 0 : i32
    return %arg0, %c0_i32 : i32, i32
  }
  func.func @transform_6(%arg0: i32) -> (i32, i32, i32) {
    %c0_i32 = arith.constant 0 : i32
    %c0_i32_0 = arith.constant 0 : i32
    %c0_i32_1 = arith.constant 0 : i32
    return %arg0, %c0_i32, %c0_i32_0 : i32, i32, i32
  }
}

</mosaic_0001>

<bundles_post_ra>
// kernel: tpu_custom_call.1
= control target key start
LH: loop header
LB: loop body
LE: loop exit
PB: predicated region body
PF: predicated region fallthrough
CT: control target
= control target key end

     0   :  { %12 = vsyncpa [#allocation3], 0  ;;  %s707_s0 = inlined_call_operand.hbm [shape: f32[16,128], index: 0, kind: input, shape index: {}]   ;;  %s708_s1 = inlined_call_operand.hbm [shape: f32[128,128], index: 1, kind: input, shape index: {}]   ;;  %s709_s2 = inlined_call_operand.vmem [shape: f32[1,128], index: 2, kind: input, shape index: {}]   ;;  %s710_s3 = inlined_call_operand.hbm [shape: bf16[128,128], index: 3, kind: input, shape index: {}]   ;;  %s711_s4 = inlined_call_operand.hbm [shape: f32[16,128], index: 4, kind: output, shape index: {0}]   ;;  %s712_s5 = inlined_call_operand.hbm [shape: f32[16,128], index: 5, kind: output, shape index: {1}]   ;;  %s713_s6 = inlined_call_operand.hbm [shape: f32[1,8,128], index: 6, kind: output, shape index: {2}]  }
   0x1   :  { %13 = vsyncpa [#allocation6], 0 }
   0x2   :  { %14 = vsyncpa [#allocation4], 0 }
   0x3   :  { %15 = vsyncpa [#allocation10], 0  ;;  %s615_s21 = smov [#allocation5]   ;;  %s616_s23 = smov [#allocation2]  }
   0x4   :  { %s33_s22 = sshll.u32 %s615_s21, 4  ;;  %s21_s24 = sshll.u32 %s616_s23, 4  ;;  %s34_s22 = int_to_ptr.vmem [resolvable:$true] %s33_s22  ;;  %s22_s24 = int_to_ptr.vmem [resolvable:$true] %s21_s24 }
   0x5   :  { %s495_s25 = scalar_lea.vmem %s34_s22, 2048  ;;  %p500_p1 = scmp.lt.s32.totalorder %s34_s22, %s34_s22 }
   0x6   :  { %p496_p0 = scmp.ne.s32.totalorder %s34_s22, %s495_s25  ;;  %p501_p2 = scmp.lt.s32.totalorder %s495_s25, %s495_s25 }
   0x8   :  { %p502_p3 = por %p501_p2, %p500_p1 }
   0xa   :  { %p503_p4 = pnand %p502_p3, %p496_p0 }
   0xc   :  { %506 = shalt.err (!%p503_p4)
}
   0xd   :  { %s617_s26 = smov 128   ;;  %s618_s27 = smov 8  }
   0xe   :  { %39 = dma.hbm_to_vmem [thread:$0]  %s708_s1, 2048, %s34_s22, [#allocation6], %s617_s26, %s617_s26, %s618_s27  }
   0xf   :  { %s515_s30 = scalar_lea.vmem %s22_s24, 256  ;;  %p520_p6 = scmp.lt.s32.totalorder %s22_s24, %s22_s24 }
  0x10   :  { %p516_p5 = scmp.ne.s32.totalorder %s22_s24, %s515_s30  ;;  %p521_p7 = scmp.lt.s32.totalorder %s515_s30, %s515_s30 }
  0x12   :  { %p522_p8 = por %p521_p7, %p520_p6 }
  0x14   :  { %p523_p9 = pnand %p522_p8, %p516_p5 }
  0x16   :  { %526 = shalt.err (!%p523_p9)
}
  0x17   :  { %27 = dma.hbm_to_vmem [thread:$0]  %s707_s0, 256, %s22_s24, [#allocation3], %s617_s26, %s617_s26, %s618_s27  }
  0x18   :  { %s619_s9 = smov [#allocation7]  }
  0x19   :  { %s47_s10 = sshll.u32 %s619_s9, 4  ;;  %s48_s10 = int_to_ptr.vmem [resolvable:$true] %s47_s10 }
  0x1a   :  { %s535_s11 = scalar_lea.vmem %s48_s10, 1024  ;;  %p540_p11 = scmp.lt.s32.totalorder %s48_s10, %s48_s10 }
  0x1b   :  { %p536_p10 = scmp.ne.s32.totalorder %s48_s10, %s535_s11  ;;  %p541_p12 = scmp.lt.s32.totalorder %s535_s11, %s535_s11 }
  0x1d   :  { %p542_p13 = por %p541_p12, %p540_p11 }
  0x1f   :  { %p543_p0 = pnand %p542_p13, %p536_p10 }
  0x21   :  { %546 = shalt.err (!%p543_p0)
}
  0x22   :  { %s620_s1 = smov 64   ;;  %s621_s12 = smov 4  }
  0x23   :  { %53 = dma.hbm_to_vmem [thread:$0]  %s710_s3, 1024, %s48_s10, [#allocation6], %s620_s1, %s620_s1, %s621_s12  }
  0x24   :  { %607 = dma.done.wait [#allocation3], 256  }
  0x25   :  { %608 = vsyncadd [#allocation3], 4294967040 }
  0x26   :  { %609 = dma.done.wait [#allocation6], 3072  }
  0x27   :  { %610 = vsyncadd [#allocation6], 4294964224  ;;  %v622_v0 = vmov 0.0   ;;  %v81_v1 = vld [vmem:[#allocation5 + $0x78] sm:$0xff]  ;;  %v80_v2 = vld [vmem:[#allocation5 + $0x70] sm:$0xff]  ;;  %vm623_vm0 = vmmov 0   ;;  %v303_v41 = vlaneseq }
  0x28   :  { %438 = vmatprep.subr.bf16.mxu1 %v622_v0  ;;  %403 = vmatprep.subr.mxu0 %v81_v1  ;;  %v79_v3 = vld [vmem:[#allocation5 + $0x68] sm:$0xff]  ;;  %v64_v4 = vld [vmem:[#allocation2] sm:$0xff]  ;;  %v471_v5 = vld [vmem:[#allocation7 + $0x38] sm:$0xff]   ;;  %v624_v36 = vmov 1.0|1.0  }
  0x29   :  { %404 = vmatpush3.xpose.msra.mxu0 %v81_v1  ;;  %435 = vmatprep.mubr.f32.mxu0 %v64_v4  ;;  %v78_v6 = vld [vmem:[#allocation5 + $0x60] sm:$0xff]  ;;  %v472_v7 = vld [vmem:[#allocation7 + $0x30] sm:$0xff]   ;;  %v77_v8 = vld [vmem:[#allocation5 + $0x58] sm:$0xff]  ;;  %v304_v43 = vand.u32 127, %v303_v41 }
  0x2a   :  { %405 = vmatprep.subr.mxu0 %v80_v2  ;;  %439 = vmatpush3.bf16.msra.mxu1 %v471_v5  ;;  %v473_v9 = vld [vmem:[#allocation7 + $0x28] sm:$0xff]   ;;  %v76_v10 = vld [vmem:[#allocation5 + $0x50] sm:$0xff]  ;;  %v474_v11 = vld [vmem:[#allocation7 + $0x20] sm:$0xff]  }
  0x2b   :  { %440 = vmatprep.subr.bf16.mxu1 %v622_v0  ;;  %v75_v12 = vld [vmem:[#allocation5 + $0x48] sm:$0xff]  ;;  %v475_v13 = vld [vmem:[#allocation7 + $0x18] sm:$0xff]   ;;  %v74_v14 = vld [vmem:[#allocation5 + $0x40] sm:$0xff]  ;;  %454 = vmatprep.mubr.msk.bf16.mxu1 %vm623_vm0, %v622_v0  ;;  %vm307_vm4 = vcmp.lt.s32.totalorder %v304_v43, 64 }
  0x2c   :  { %v476_v15 = vld [vmem:[#allocation7 + $0x10] sm:$0xff]   ;;  %v73_v16 = vld [vmem:[#allocation5 + $0x38] sm:$0xff]  ;;  %v71_v18 = vld [vmem:[#allocation5 + $0x28] sm:$0xff] }
  0x2d   :  { %406 = vmatpush3.xpose.msra.mxu0 %v80_v2  ;;  %v72_v17 = vld [vmem:[#allocation5 + $0x30] sm:$0xff]  ;;  %v70_v19 = vld [vmem:[#allocation5 + $0x20] sm:$0xff]  ;;  %v69_v20 = vld [vmem:[#allocation5 + $0x18] sm:$0xff] }
  0x2e   :  { %407 = vmatprep.subr.mxu0 %v79_v3  ;;  %441 = vmatpush3.bf16.msra.mxu1 %v472_v7  ;;  %v68_v21 = vld [vmem:[#allocation5 + $0x10] sm:$0xff]  ;;  %v67_v22 = vld [vmem:[#allocation5 + $0x8] sm:$0xff]  ;;  %v66_v23 = vld [vmem:[#allocation5] sm:$0xff] }
  0x2f   :  { %442 = vmatprep.subr.bf16.mxu1 %v622_v0  ;;  %v65_v24 = vld [vmem:[#allocation2 + $0x8] sm:$0xff]  ;;  %v477_v25 = vld [vmem:[#allocation7 + $0x8] sm:$0xff]   ;;  %v478_v26 = vld [vmem:[#allocation7] sm:$0xff]  }
  0x30   :  { %v361_v27 = vld [vmem:[%s709_s2] ss:$0 sm:$0xff]  ;;  %s625_s2 = smov [#allocation9]  }
  0x31   :  { %408 = vmatpush3.xpose.msra.mxu0 %v79_v3  ;;  %s331_s15 = sshll.u32 %s625_s2, 4  ;;  %s332_s15 = int_to_ptr.vmem [resolvable:$true] %s331_s15 }
  0x32   :  { %409 = vmatprep.subr.mxu0 %v78_v6  ;;  %443 = vmatpush3.bf16.msra.mxu1 %v473_v9  ;;  %s547_s16 = scalar_lea.vmem %s332_s15, 256  ;;  %p552_p2 = scmp.lt.s32.totalorder %s332_s15, %s332_s15 }
  0x33   :  { %444 = vmatprep.subr.bf16.mxu1 %v622_v0  ;;  %p548_p1 = scmp.ne.s32.totalorder %s332_s15, %s547_s16  ;;  %p553_p3 = scmp.lt.s32.totalorder %s547_s16, %s547_s16 }
  0x35   :  { %410 = vmatpush3.xpose.msra.mxu0 %v78_v6  ;;  %p554_p4 = por %p553_p3, %p552_p2 }
  0x36   :  { %411 = vmatprep.subr.mxu0 %v77_v8  ;;  %445 = vmatpush3.bf16.msra.mxu1 %v474_v11 }
  0x37   :  { %446 = vmatprep.subr.bf16.mxu1 %v622_v0  ;;  %p555_p5 = pnand %p554_p4, %p548_p1 }
  0x39   :  { %412 = vmatpush3.xpose.msra.mxu0 %v77_v8 }
  0x3a   :  { %413 = vmatprep.subr.mxu0 %v76_v10  ;;  %447 = vmatpush3.bf16.msra.mxu1 %v475_v13 }
  0x3b   :  { %448 = vmatprep.subr.bf16.mxu1 %v622_v0 }
  0x3d   :  { %414 = vmatpush3.xpose.msra.mxu0 %v76_v10 }
  0x3e   :  { %415 = vmatprep.subr.mxu0 %v75_v12  ;;  %449 = vmatpush3.bf16.msra.mxu1 %v476_v15 }
  0x3f   :  { %450 = vmatprep.subr.bf16.mxu1 %v622_v0 }
  0x41   :  { %416 = vmatpush3.xpose.msra.mxu0 %v75_v12 }
  0x42   :  { %417 = vmatprep.subr.mxu0 %v74_v14  ;;  %451 = vmatpush3.bf16.msra.mxu1 %v477_v25 }
  0x43   :  { %452 = vmatprep.subr.bf16.mxu1 %v622_v0 }
  0x45   :  { %418 = vmatpush3.xpose.msra.mxu0 %v74_v14 }
  0x46   :  { %419 = vmatprep.subr.mxu0 %v73_v16  ;;  %453 = vmatpush3.bf16.msra.mxu1 %v478_v26 }
  0x49   :  { %420 = vmatpush3.xpose.msra.mxu0 %v73_v16 }
  0x4a   :  { %421 = vmatprep.subr.mxu0 %v72_v17 }
  0x4d   :  { %422 = vmatpush3.xpose.msra.mxu0 %v72_v17 }
  0x4e   :  { %423 = vmatprep.subr.mxu0 %v71_v18 }
  0x51   :  { %424 = vmatpush3.xpose.msra.mxu0 %v71_v18 }
  0x52   :  { %425 = vmatprep.subr.mxu0 %v70_v19 }
  0x55   :  { %426 = vmatpush3.xpose.msra.mxu0 %v70_v19 }
  0x56   :  { %427 = vmatprep.subr.mxu0 %v69_v20 }
  0x59   :  { %428 = vmatpush3.xpose.msra.mxu0 %v69_v20 }
  0x5a   :  { %429 = vmatprep.subr.mxu0 %v68_v21 }
  0x5d   :  { %430 = vmatpush3.xpose.msra.mxu0 %v68_v21 }
  0x5e   :  { %431 = vmatprep.subr.mxu0 %v67_v22 }
  0x61   :  { %432 = vmatpush3.xpose.msra.mxu0 %v67_v22 }
  0x62   :  { %433 = vmatprep.subr.mxu0 %v66_v23 }
  0x65   :  { %434 = vmatpush3.xpose.msra.mxu0 %v66_v23 }
  0x68   :  { %436 = vmatmul.mubr.f32.vlgmr.msra.gmra.mxu0 %v65_v24 }
 0x128   :  { %v437_v28 = vpop.f32.mrf.mxu0 }
 0x129   :  { %v161_v29 = vadd.f32 %v437_v28, %v361_v27 }
 0x12a   :  { %v155_v30 = vpop.f32.mrf.mxu0 }
 0x12b   :  { %vm165_vm1 = vcmp.gt.f32.partialorder %v161_v29, 0.0  ;;  %v375_v31 = vmul.f32 -1.442695, %v161_v29  ;;  %v156_v32 = vadd.f32 %v361_v27, %v155_v30 }
 0x12c   :  { %v363_v33 = vsel %vm165_vm1, 1.0, %v622_v0 }
 0x12d   :  { %479 = vpow2.f32 %v375_v31  ;;  %171 = vst [vmem:[#allocation9 + $0x8] sm:$0xff] %v363_v33  ;;  %vm164_vm2 = vcmp.gt.f32.partialorder %v156_v32, 0.0  ;;  %v374_v34 = vmul.f32 -1.442695, %v156_v32 }
 0x12e   :  { %v362_v35 = vsel %vm164_vm2, 1.0, %v622_v0  ;;  %vm372_vm3 = vmpackc.low %vm165_vm1, %vm164_vm2 }
 0x12f   :  { %481 = vpow2.f32 %v374_v34  ;;  %170 = vst [vmem:[#allocation9] sm:$0xff] %v362_v35  ;;  %455 = vmatmul.mubr.msk.bf16.vlgmr.msra.gmra.mxu1 %vm372_vm3, %v624_v36 }
 0x13a   :  { %v480_v37 = vpop.eup %479 }
 0x13b   :  { %v287_v38 = vadd.f32 1.0, %v480_v37 }
 0x13c   :  { %v482_v39 = vpop.eup %481 }
 0x13d   :  { %483 = vrcp.f32 %v287_v38  ;;  %v286_v40 = vadd.f32 1.0, %v482_v39 }
 0x13f   :  { %485 = vrcp.f32 %v286_v40 }
 0x14a   :  { %v484_v42 = vpop.eup %483 }
 0x14b   :  { %v293_v44 = vsub.f32 1.0, %v484_v42 }
 0x14c   :  { %v486_v45 = vpop.eup %485 }
 0x14d   :  { %v292_v46 = vsub.f32 1.0, %v486_v45  ;;  %v295_v47 = vmul.f32 %v484_v42, %v293_v44 }
 0x14f   :  { %v294_v48 = vmul.f32 %v486_v45, %v292_v46  ;;  %v311_v50 = vsel %vm307_vm4, %v295_v47, 0.0 }
 0x151   :  { %v310_v49 = vsel %vm307_vm4, %v294_v48, 0.0 }
 0x152   :  { %v312_v51 = vadd.f32 %v311_v50, %v310_v49 }
 0x154   :  { %313 = vst [vmem:[#allocation11] sm:$0xff] %v312_v51 }
 0x155   :  { %558 = shalt.err (!%p555_p5)
}
 0x156   :  { %337 = dma.vmem_to_hbm [thread:$0]  %s332_s15, 256, %s712_s5, [#allocation10], %s617_s26, %s617_s26, %s618_s27  }
 0x157   :  { %s626_s19 = smov [#allocation11]  }
 0x158   :  { %s344_s20 = sshll.u32 %s626_s19, 4  ;;  %s345_s20 = int_to_ptr.vmem [resolvable:$true] %s344_s20 }
 0x159   :  { %s567_s21 = scalar_lea.vmem %s345_s20, 128  ;;  %p572_p7 = scmp.lt.s32.totalorder %s345_s20, %s345_s20 }
 0x15a   :  { %p568_p6 = scmp.ne.s32.totalorder %s345_s20, %s567_s21  ;;  %p573_p8 = scmp.lt.s32.totalorder %s567_s21, %s567_s21 }
 0x15c   :  { %p574_p9 = por %p573_p8, %p572_p7 }
 0x15e   :  { %p575_p10 = pnand %p574_p9, %p568_p6 }
 0x160   :  { %578 = shalt.err (!%p575_p10)
}
 0x161   :  { %347 = dma.vmem_to_hbm [thread:$0]  %s345_s20, 128, %s713_s6, [#allocation10]  }
 0x162   :  { %s627_s24 = smov [#allocation8]  }
 0x163   :  { %s319_s25 = sshll.u32 %s627_s24, 4  ;;  %s320_s25 = int_to_ptr.vmem [resolvable:$true] %s319_s25 }
 0x164   :  { %s587_s5 = scalar_lea.vmem %s320_s25, 256  ;;  %p592_p12 = scmp.lt.s32.totalorder %s320_s25, %s320_s25 }
 0x165   :  { %p588_p11 = scmp.ne.s32.totalorder %s320_s25, %s587_s5  ;;  %p593_p13 = scmp.lt.s32.totalorder %s587_s5, %s587_s5 }
 0x167   :  { %p594_p0 = por %p593_p13, %p592_p12 }
 0x169   :  { %p595_p1 = pnand %p594_p0, %p588_p11 }
 0x1ef   :  { %v271_v52 = vpop.f32.mrf.mxu1 }
 0x1f0   :  { %278 = vst [vmem:[#allocation8] sm:$0xff] %v271_v52 }
 0x1f1   :  { %v456_v53 = vpop.f32.mrf.mxu1 }
 0x1f3   :  { %v274_v54 = vpop.f32.mrf.mxu1 }
 0x1f4   :  { %279 = vst [vmem:[#allocation8 + $0x8] sm:$0xff] %v274_v54 }
 0x1f5   :  { %v457_v55 = vpop.f32.mrf.mxu1 }
 0x1f6   :  { %598 = shalt.err (!%p595_p1)
}
 0x1f7   :  { %325 = dma.vmem_to_hbm [thread:$0]  %s320_s25, 256, %s711_s4, [#allocation4], %s617_s26, %s617_s26, %s618_s27  }
 0x1f8   :  { %611 = dma.done.wait [#allocation4], 256  }
 0x1f9   :  { %612 = vsyncadd [#allocation4], 4294967040 }
 0x1fa   :  { %613 = dma.done.wait [#allocation10], 384  }
 0x1fb   :  { %614 = vsyncadd [#allocation10], 4294966912 }
 0x1fc   :  { %357 = vsyncpa [#allocation3], 1 }
 0x1fd   :  { %358 = vsyncpa [#allocation6], 1 }
 0x1fe   :  { %359 = vsyncpa [#allocation4], 1 }
 0x1ff   :  { %360 = vsyncpa [#allocation10], 1 }

</bundles_post_ra>
